<compile_context>
chip_gen: v5e
topology: v5e:2x2
jax: 0.10.0
libtpu: 0.0.40
codegen_flags: <defaults>
</compile_context>

<pallas_src>
import numpy as np
import jax
import jax.numpy as jnp
from jax.experimental import pallas as pl
from jax.experimental.pallas import tpu as pltpu

# irreps = ["8x0e + 4x1o", "16x0e + 8x1o", "8x0e + 4x1o"]  (as (mul, l) pairs)
IRREPS = [
    [(8, 0), (4, 1)],    # input  -> dim 20
    [(16, 0), (8, 1)],   # hidden -> dim 40
    [(8, 0), (4, 1)],    # output -> dim 20
]


def irreps_dim(irreps):
    return sum(mul * (2 * l + 1) for mul, l in irreps)


def o3_linear_weight(key, irreps_in, irreps_out):
    """Dense (dim_in, dim_out) equivalent of o3.Linear(biases=False,
    path_normalization='element'): per-irrep weight ~N(0,1) of shape
    (mul_in, mul_out), path weight mul_in**-0.5, identical action on the
    2l+1 components (kron with identity), placed block-diagonally."""
    d_in, d_out = irreps_dim(irreps_in), irreps_dim(irreps_out)
    W = jnp.zeros((d_in, d_out), jnp.float32)
    r = c = 0
    for (mul_in, l_in), (mul_out, l_out) in zip(irreps_in, irreps_out):
        assert l_in == l_out
        key, sub = jax.random.split(key)
        w = jax.random.normal(sub, (mul_in, mul_out), dtype=jnp.float32)
        pw = 1.0 / np.sqrt(mul_in)  # path_normalization='element', one path per output
        blk = jnp.kron(w * pw, jnp.eye(2 * l_in + 1, dtype=jnp.float32))
        W = W.at[r:r + blk.shape[0], c:c + blk.shape[1]].set(blk)
        r += blk.shape[0]
        c += blk.shape[1]
    return W


def segment_matrix(irreps):
    """(dim, n_mult) 0/1 matrix: column u sums the 2l+1 components belonging to
    multiplicity slot u (per-irrep norms and broadcasting the per-irrep scale
    back to components)."""
    dim = irreps_dim(irreps)
    nmul = sum(mul for mul, _ in irreps)
    S = np.zeros((dim, nmul), np.float32)
    comp = slot = 0
    for mul, l in irreps:
        for _u in range(mul):
            for _m in range(2 * l + 1):
                S[comp, slot] = 1.0
                comp += 1
            slot += 1
    return jnp.asarray(S)


def prepare_params(w1, seg, w2, dtype=jnp.bfloat16):
    """Fold the weight transposes + bf16 casts offline (MXU-native operands).
    Returns (w1^T, seg^T, seg, w2^T) ready for the kernel."""
    return (w1.T.astype(dtype), seg.T.astype(dtype),
            seg.astype(dtype), w2.T.astype(dtype))


def _linearlayer_kernel(xt_ref, w1t_ref, segt_ref, seg_ref, w2t_ref, ot_ref):
    # All operands keep the batch axis (N) on lanes -> lane-dense vregs throughout.
    xt = xt_ref[...]                                                       # (d_in, tn) bf16
    # --- o3.Linear #1 (dense block-diagonal equivalent), transposed: h^T = W1^T @ x^T ---
    ht = jnp.dot(w1t_ref[...], xt, preferred_element_type=jnp.float32)     # (d_hid, tn) f32
    # --- NormActivation(gelu): per-multiplicity L2 norm over 2l+1 components ---
    hsq = ht * ht                                                          # f32 VPU
    nsq = jnp.maximum(
        jnp.dot(segt_ref[...], hsq.astype(jnp.bfloat16),
                preferred_element_type=jnp.float32), 0.0)                  # (n_mult, tn)
    norm = jnp.sqrt(nsq)
    # gelu(n)/n == Phi(n) ~= 0.5*(1 + tanh(c*(n + 0.044715*n^3))); finite at n==0,
    # single EUP tanh, ~6 VPU ops on the (n_mult, tn) slab.
    u = np.float32(0.7978845608028654) * norm * (1.0 + np.float32(0.044715) * nsq)
    factor = 0.5 * (1.0 + jnp.tanh(u))                                     # (n_mult, tn)
    scale = jnp.dot(seg_ref[...], factor.astype(jnp.bfloat16),
                    preferred_element_type=jnp.float32)                    # (d_hid, tn)
    hg = (ht * scale).astype(jnp.bfloat16)
    # --- o3.Linear #2 (transposed) ---
    ot_ref[...] = jnp.dot(w2t_ref[...], hg,
                          preferred_element_type=jnp.float32).astype(ot_ref.dtype)


def linear_layer_forward(inputs, params, *, tile_n=8192, feature_transposed=False):
    """params: either raw (w1, seg, w2) or prepared (w1^T, seg^T, seg, w2^T) bf16.
    feature_transposed=True accepts/returns the lane-major (d, N) layout directly,
    eliminating both wrapper-side HBM relayouts for callers that keep it end-to-end."""
    feature = inputs["feature"] if isinstance(inputs, dict) else inputs
    if len(params) == 3:
        w1t, segt, seg, w2t = prepare_params(*params)
    else:
        w1t, segt, seg, w2t = params

    d_hid, d_in = w1t.shape
    n_mult = segt.shape[0]
    d_out = w2t.shape[0]
    N = feature.shape[-1] if feature_transposed else feature.shape[0]
    out_dtype = feature.dtype

    # Lane tiling: multiple of 128, big enough to amortize per-step overhead,
    # and always >= 2 grid steps so v7x megacore ("parallel") has work per core.
    assert tile_n % 128 == 0, "tile_n must be a multiple of 128"
    n128 = max(128, pl.cdiv(N, 128) * 128)
    tile = min(tile_n, max(128, pl.cdiv(n128, 2 * 128) * 128))
    num_tiles = max(2, pl.cdiv(N, tile))
    n_pad = num_tiles * tile

    # Fused transpose + downcast: one XLA relayout of x, half the written bytes
    # and half the streamed DMA bytes into the kernel.
    xt = feature.astype(jnp.bfloat16) if feature_transposed \
        else feature.T.astype(jnp.bfloat16)                                # (d_in, N)
    if n_pad != N:
        xt = jnp.pad(xt, ((0, 0), (0, n_pad - N)))   # Phi(0)=0.5 -> padded cols stay 0

    cost = pl.CostEstimate(
        flops=2 * n_pad * (d_in * d_hid + 2 * d_hid * n_mult + d_hid * d_out),
        transcendentals=2 * n_pad * n_mult,  # sqrt + tanh per norm element
        bytes_accessed=(2 * n_pad * d_in + 4 * n_pad * d_out
                        + 2 * (d_in * d_hid + 2 * d_hid * n_mult + d_hid * d_out)),
    )

    out_t = pl.pallas_call(
        _linearlayer_kernel,
        out_shape=jax.ShapeDtypeStruct((d_out, n_pad), out_dtype),
        grid=(num_tiles,),
        in_specs=[
            pl.BlockSpec((d_in, tile), lambda i: (0, i)),     # streamed, lane-dense
            pl.BlockSpec((d_hid, d_in), lambda i: (0, 0)),    # weights: constant block
            pl.BlockSpec((n_mult, d_hid), lambda i: (0, 0)),  #   index -> stay resident,
            pl.BlockSpec((d_hid, n_mult), lambda i: (0, 0)),  #   no per-step re-DMA
            pl.BlockSpec((d_out, d_hid), lambda i: (0, 0)),
        ],
        out_specs=pl.BlockSpec((d_out, tile), lambda i: (0, i)),
        compiler_params=pltpu.CompilerParams(
            dimension_semantics=("parallel",),
            vmem_limit_bytes=32 * 1024 * 1024,   # explicit: raises v5e's 16 MiB default,
        ),                                       # keeps headroom on v7x's 64 MiB VMEM
        cost_estimate=cost,
    )(xt, w1t, segt, seg, w2t)

    out = out_t[:, :N] if feature_transposed else out_t[:, :N].T

    if isinstance(inputs, dict):
        outputs = {"feature": out}
        for k, v in inputs.items():
            if k not in outputs:
                outputs[k] = v
        return outputs
    return out


def _linear_layer_reference(x, params):
    """Pure-JAX reference (exact erf gelu) for correctness checking."""
    w1, seg, w2 = params
    h = x @ w1
    norm = jnp.sqrt(jnp.maximum((h * h) @ seg, 0.0))
    factor = 0.5 * (1.0 + jax.scipy.special.erf(norm / jnp.sqrt(2.0)))
    h = h * (factor @ seg.T)
    return h @ w2


if __name__ == "__main__":
    key = jax.random.PRNGKey(0)
    k_x, k_w1, k_w2 = jax.random.split(key, 3)

    N = 64                                  # number of points (batch of features)
    d_in = irreps_dim(IRREPS[0])            # 20
    x = jax.random.normal(k_x, (N, d_in), dtype=jnp.float32)

    w1 = o3_linear_weight(k_w1, IRREPS[0], IRREPS[1])   # (20, 40)
    w2 = o3_linear_weight(k_w2, IRREPS[1], IRREPS[2])   # (40, 20)
    seg = segment_matrix(IRREPS[1])                     # (40, 24)
    raw_params = (w1, seg, w2)
    params = prepare_params(w1, seg, w2)                # offline fold: transpose + bf16

    out = linear_layer_forward({"feature": x}, params)
    jax.block_until_ready(out["feature"])

    d_out = irreps_dim(IRREPS[2])
    assert out["feature"].shape == (N, d_out)
    assert bool(jnp.all(jnp.isfinite(out["feature"])))

    ref = _linear_layer_reference(x, raw_params)
    assert bool(jnp.allclose(out["feature"], ref, atol=2e-2, rtol=2e-2)), \
        float(jnp.max(jnp.abs(out["feature"] - ref)))

    print("KERNEL_OK")
</pallas_src>

<mosaic_0001>
module attributes {stable_mosaic.version = 11 : i64} {
  func.func @_linearlayer_kernel(%arg0: i32, %arg1: memref<20x128xbf16, #tpu.memory_space<vmem>>, %arg2: memref<40x20xbf16, #tpu.memory_space<vmem>>, %arg3: memref<24x40xbf16, #tpu.memory_space<vmem>>, %arg4: memref<40x24xbf16, #tpu.memory_space<vmem>>, %arg5: memref<20x40xbf16, #tpu.memory_space<vmem>>, %arg6: memref<20x128xf32, #tpu.memory_space<vmem>>) attributes {dimension_semantics = [#tpu.dimension_semantics<parallel>], iteration_bounds = array<i64: 2>, scalar_prefetch = 0 : i64, scratch_operands = 0 : i64, tpu.core_type = #tpu.core_type<tc>, window_params = [{transform_indices = @transform_0, window_bounds = array<i64: 20, 128>}, {pipeline_mode = #tpu.pipeline_mode<synchronous>, transform_indices = @transform_1, window_bounds = array<i64: 40, 20>}, {pipeline_mode = #tpu.pipeline_mode<synchronous>, transform_indices = @transform_2, window_bounds = array<i64: 24, 40>}, {pipeline_mode = #tpu.pipeline_mode<synchronous>, transform_indices = @transform_3, window_bounds = array<i64: 40, 24>}, {pipeline_mode = #tpu.pipeline_mode<synchronous>, transform_indices = @transform_4, window_bounds = array<i64: 20, 40>}, {transform_indices = @transform_5, window_bounds = array<i64: 20, 128>}]} {
    %c0 = arith.constant 0 : index
    %c0_0 = arith.constant 0 : index
    %0 = vector.load %arg1[%c0, %c0_0] : memref<20x128xbf16, #tpu.memory_space<vmem>>, vector<20x128xbf16>
    %c0_1 = arith.constant 0 : index
    %c0_2 = arith.constant 0 : index
    %1 = vector.load %arg2[%c0_1, %c0_2] : memref<40x20xbf16, #tpu.memory_space<vmem>>, vector<40x20xbf16>
    %cst = arith.constant dense<0.000000e+00> : vector<40x128xf32>
    %2 = tpu.matmul %1, %0, %cst {dimension_numbers = #tpu.dot_dimension_numbers<[1], [0], [0], [1], [0, 0, 1, 1], [], []>} : vector<40x20xbf16>, vector<20x128xbf16>, vector<40x128xf32> -> vector<40x128xf32>
    %3 = arith.mulf %2, %2 : vector<40x128xf32>
    %c0_3 = arith.constant 0 : index
    %c0_4 = arith.constant 0 : index
    %4 = vector.load %arg3[%c0_3, %c0_4] : memref<24x40xbf16, #tpu.memory_space<vmem>>, vector<24x40xbf16>
    %5 = arith.truncf %3 : vector<40x128xf32> to vector<40x128xbf16>
    %cst_5 = arith.constant dense<0.000000e+00> : vector<24x128xf32>
    %6 = tpu.matmul %4, %5, %cst_5 {dimension_numbers = #tpu.dot_dimension_numbers<[1], [0], [0], [1], [0, 0, 1, 1], [], []>} : vector<24x40xbf16>, vector<40x128xbf16>, vector<24x128xf32> -> vector<24x128xf32>
    %cst_6 = arith.constant 0.000000e+00 : f32
    %7 = vector.broadcast %cst_6 : f32 to vector<24x128xf32>
    %8 = arith.maximumf %6, %7 : vector<24x128xf32>
    %9 = math.sqrt %8 : vector<24x128xf32>
    %cst_7 = arith.constant 0.797884583 : f32
    %10 = vector.broadcast %cst_7 : f32 to vector<24x128xf32>
    %11 = arith.mulf %10, %9 : vector<24x128xf32>
    %cst_8 = arith.constant 4.471500e-02 : f32
    %12 = vector.broadcast %cst_8 : f32 to vector<24x128xf32>
    %13 = arith.mulf %12, %8 : vector<24x128xf32>
    %cst_9 = arith.constant 1.000000e+00 : f32
    %14 = vector.broadcast %cst_9 : f32 to vector<24x128xf32>
    %15 = arith.addf %14, %13 : vector<24x128xf32>
    %16 = arith.mulf %11, %15 : vector<24x128xf32>
    %17 = math.tanh %16 : vector<24x128xf32>
    %cst_10 = arith.constant 1.000000e+00 : f32
    %18 = vector.broadcast %cst_10 : f32 to vector<24x128xf32>
    %19 = arith.addf %18, %17 : vector<24x128xf32>
    %cst_11 = arith.constant 5.000000e-01 : f32
    %20 = vector.broadcast %cst_11 : f32 to vector<24x128xf32>
    %21 = arith.mulf %20, %19 : vector<24x128xf32>
    %c0_12 = arith.constant 0 : index
    %c0_13 = arith.constant 0 : index
    %22 = vector.load %arg4[%c0_12, %c0_13] : memref<40x24xbf16, #tpu.memory_space<vmem>>, vector<40x24xbf16>
    %23 = arith.truncf %21 : vector<24x128xf32> to vector<24x128xbf16>
    %cst_14 = arith.constant dense<0.000000e+00> : vector<40x128xf32>
    %24 = tpu.matmul %22, %23, %cst_14 {dimension_numbers = #tpu.dot_dimension_numbers<[1], [0], [0], [1], [0, 0, 1, 1], [], []>} : vector<40x24xbf16>, vector<24x128xbf16>, vector<40x128xf32> -> vector<40x128xf32>
    %25 = arith.mulf %2, %24 : vector<40x128xf32>
    %26 = arith.truncf %25 : vector<40x128xf32> to vector<40x128xbf16>
    %c0_15 = arith.constant 0 : index
    %c0_16 = arith.constant 0 : index
    %27 = vector.load %arg5[%c0_15, %c0_16] : memref<20x40xbf16, #tpu.memory_space<vmem>>, vector<20x40xbf16>
    %cst_17 = arith.constant dense<0.000000e+00> : vector<20x128xf32>
    %28 = tpu.matmul %27, %26, %cst_17 {dimension_numbers = #tpu.dot_dimension_numbers<[1], [0], [0], [1], [0, 0, 1, 1], [], []>} : vector<20x40xbf16>, vector<40x128xbf16>, vector<20x128xf32> -> vector<20x128xf32>
    %c0_18 = arith.constant 0 : index
    %c0_19 = arith.constant 0 : index
    %29 = vector.load %arg6[%c0_18, %c0_19] : memref<20x128xf32, #tpu.memory_space<vmem>>, vector<20x128xf32>
    tpu.vector_store %arg6[%c0_18, %c0_19], %28 {strides = array<i32>} : memref<20x128xf32, #tpu.memory_space<vmem>>, vector<20x128xf32>,
    return
  }
  func.func @transform_0(%arg0: i32) -> (i32, i32) {
    %c0_i32 = arith.constant 0 : i32
    %c0_i32_0 = arith.constant 0 : i32
    return %c0_i32, %arg0 : i32, i32
  }
  func.func @transform_1(%arg0: i32) -> (i32, i32) {
    %c0_i32 = arith.constant 0 : i32
    %c0_i32_0 = arith.constant 0 : i32
    %c0_i32_1 = arith.constant 0 : i32
    return %c0_i32, %c0_i32_0 : i32, i32
  }
  func.func @transform_2(%arg0: i32) -> (i32, i32) {
    %c0_i32 = arith.constant 0 : i32
    %c0_i32_0 = arith.constant 0 : i32
    %c0_i32_1 = arith.constant 0 : i32
    return %c0_i32, %c0_i32_0 : i32, i32
  }
  func.func @transform_3(%arg0: i32) -> (i32, i32) {
    %c0_i32 = arith.constant 0 : i32
    %c0_i32_0 = arith.constant 0 : i32
    %c0_i32_1 = arith.constant 0 : i32
    return %c0_i32, %c0_i32_0 : i32, i32
  }
  func.func @transform_4(%arg0: i32) -> (i32, i32) {
    %c0_i32 = arith.constant 0 : i32
    %c0_i32_0 = arith.constant 0 : i32
    %c0_i32_1 = arith.constant 0 : i32
    return %c0_i32, %c0_i32_0 : i32, i32
  }
  func.func @transform_5(%arg0: i32) -> (i32, i32) {
    %c0_i32 = arith.constant 0 : i32
    %c0_i32_0 = arith.constant 0 : i32
    return %c0_i32, %arg0 : i32, i32
  }
}

</mosaic_0001>

<bundles_post_ra>
// kernel: tpu_custom_call.1
= control target key start
LH: loop header
LB: loop body
LE: loop exit
PB: predicated region body
PF: predicated region fallthrough
CT: control target
= control target key end

     0   :  { %10 = vsyncpa [#allocation4], 0  ;;  %s1002_s0 = inlined_call_operand.vmem [shape: bf16[20,256], index: 0, kind: input, shape index: {}]   ;;  %s1003_s1 = inlined_call_operand.vmem [shape: bf16[40,20], index: 1, kind: input, shape index: {}]   ;;  %s1004_s2 = inlined_call_operand.vmem [shape: bf16[24,40], index: 2, kind: input, shape index: {}]   ;;  %s1005_s3 = inlined_call_operand.vmem [shape: bf16[40,24], index: 3, kind: input, shape index: {}]   ;;  %s1006_s4 = inlined_call_operand.vmem [shape: bf16[20,40], index: 4, kind: input, shape index: {}]   ;;  %s1007_s5 = inlined_call_operand.hbm [shape: f32[20,256], index: 5, kind: output, shape index: {}]  }
   0x1   :  { %12 = vsyncpa [#allocation4 + $0x1], 0  ;;  %s845_s18 = smov 0   ;;  %s847_s19 = smov 0  }
   0x2   :  { %s849_s20 = smov 0   ;;  %s851_s21 = smov 0  }
   0x3 LB: > { %s637_s22 = sadd.s32 4294967295, %s810_s21   ;;  %s638_s23 = sadd.s32 4294967294, %s810_s21   ;;  %s810_s21 = sphi %s851_s21, %s1013_s21   ;;  %s806_s20 = sphi %s849_s20, %s1012_s20   ;;  %s802_s19 = sphi %s847_s19, %s1011_s19   ;;  %s798_s18 = sphi %s845_s18, %s1010_s18  }
   0x4   : > { %s868_s24 = sadd.s32 1, %s810_s21   ;;  %s25_s25 = sadd.s32 1, %s806_s20 }
   0x5   : > { %s22_s26 = ssub.s32 %s810_s21, %s868_s24  ;;  %p32_p0 = scmp.ne.s32.totalorder %s806_s20, %s802_s19 }
   0x6   : > { %p23_p1 = scmp.eq.s32.totalorder %s22_s26, 0  ;;  %p33_p2 = scmp.eq.s32.totalorder %s810_s21, 0 }
   0x7   : > { %p146_p3 = scmp.eq.s32.totalorder %s637_s22, 1  ;;  %p151_p4 = scmp.ne.s32.totalorder %s802_s19, %s798_s18 }
   0x8   : > { %s881_s27 = scalar_select %p23_p1, %s806_s20, %s25_s25  }
   0x9   : > { %p34_p5 = por %p33_p2, %p32_p0  ;;  %p883_p6 = por %p146_p3, %p32_p0 }
   0xa   : > { %p152_p7 = scmp.eq.s32.totalorder %s638_s23, 1  ;;  %p640_p9 = scmp.ge.s32.totalorder %s810_s21, 2 }
   0xc   : > { %p887_p8 = por %p152_p7, %p151_p4  ;;  %180 = sbr.rel (%p640_p9) target bundleno = 25 (0x19), region = 32 }
  0x11   : > { %183 = sbr.rel (!%p34_p5) target bundleno = 25 (0x19), region = 36  ;;  %s185_s30 = sand.u32 (%p34_p5), 1, %s806_s20  }
  0x12   : > { %s641_s6 = sshll.u32 (%p34_p5), %s810_s21, 2  ;;  %s691_s7 = smul.u32 (%p34_p5), 12, %s185_s30 }
  0x13   : > { %s189_s10 = scalar_lea.vmem (%p34_p5), %s1002_s0, %s641_s6 }
  0x14   : > { %v206_v0 = vld [vmem:[%s189_s10] sm:$0xf] (%p34_p5)  ;;  %v208_v1 = vld [vmem:[%s189_s10 + $0x8] sm:$0xf] (%p34_p5)  ;;  %v210_v2 = vld [vmem:[%s189_s10 + $0x10] sm:$0xf] (%p34_p5) }
  0x15   : > { %s187_s11 = scalar_lea.vmem (%p34_p5), [#allocation2], %s691_s7 }
  0x16   : > { %207 = vst [vmem:[%s187_s11] sm:$0xf] %v206_v0 }
  0x17   : > { %209 = vst [vmem:[%s187_s11 + $0x4] sm:$0xf] %v208_v1 }
  0x18   : > { %211 = vst [vmem:[%s187_s11 + $0x8] sm:$0xf] %v210_v2 }
  0x19 PF: > { %p642_p10 = scmp.ge.s32.totalorder %s810_s21, 1  ;;  %p240_p11 = scmp.lt.s32.totalorder %s810_s21, 3 }
  0x1b   : > { %p241_p12 = pnand %p642_p10, %p240_p11 }
  0x1c   : > { %s902_s12 = sand.u32 (!%p241_p12), 1, %s802_s19   ;;  %s681_s6 = sshll.u32 (!%p241_p12), %s637_s22, 3 }
  0x1d   : > { %244 = sbr.rel (%p241_p12) target bundleno = 747 (0x2eb), region = 77  ;;  %s566_s9 = scalar_lea.hbm (!%p241_p12), %s1007_s5, %s681_s6 }
  0x1e   : > { %s692_s13 = smul.u32 (!%p241_p12), 12, %s902_s12  ;;  %s569_s11 = sshll.u32 (!%p241_p12), %s566_s9, 4  ;;  %s570_s11 = int_to_ptr.hbm [resolvable:$true] %s569_s11 }
  0x1f   : > { %s693_s26 = smul.u32 (!%p241_p12), 24, %s902_s12  ;;  %s768_s17 = scalar_lea.hbm (!%p241_p12), %s1007_s5, 48 }
  0x20   : > { %s249_s14 = scalar_lea.vmem (!%p241_p12), [#allocation2], %s692_s13  ;;  %s556_s13 = scalar_lea.sflag (!%p241_p12), [#allocation4], %s902_s12 }
  0x21   : > { %s273_s30 = scalar_lea.vmem (!%p241_p12), [#allocation3], %s693_s26 }
  0x22   : > { %v277_v3 = vld [vmem:[%s249_s14 + $0x8] sm:$0x3]  ;;  %vm315_vm0 = vcmask 1041408   ;;  %v684_v7 = vld [vmem:[%s249_s14] sm:$0xff]  ;;  %vm305_vm1 = vcmask 162816   ;;  %vm368_vm2 = vcmask 1043456  }
  0x23   : > { %v301_v4 = vunpack.c.l.b16 %v277_v3  ;;  %v685_v8 = vld [vmem:[%s1003_s1] sm:$0xff]  ;;  %v686_v9 = vld [vmem:[%s1003_s1 + $0x8] sm:$0xff]  ;;  %v282_v10 = vld [vmem:[%s1003_s1 + $0x10] sm:$0xf]  ;;  %vm361_vm3 = vcmask 326656   ;;  %vm470_vm10 = vcmask 195584  }
  0x24   : > { %v292_v11 = vunpack.c.l.b16 %v282_v10  ;;  %v687_v28 = vld [vmem:[%s1004_s2] sm:$0xff]  ;;  %v349_v29 = vld [vmem:[%s1004_s2 + $0x8] sm:$0xf]  ;;  %s567_s10 = sshll.u32 %s273_s30, 4  ;;  %s762_s14 = sshra.s32 %s570_s11, 4  ;;  %s568_s10 = int_to_ptr.vmem [resolvable:$true] %s567_s10  ;;  %s763_s14 = int_to_ptr.hbm [resolvable:$true] %s762_s14 }
  0x25   : > { %v303_v5 = vpack.c.b16 %v301_v4, %v301_v4  ;;  %v358_v30 = vunpack.c.l.b16 %v349_v29  ;;  %s764_s15 = scalar_lea.hbm %s763_s14, 24  ;;  %p769_p2 = scmp.lt.s32.totalorder %s763_s14, %s1007_s5 }
  0x26   : > { %v295_v12 = vpack.c.b16 %v292_v11, %v292_v11  ;;  %p765_p13 = scmp.ne.s32.totalorder %s763_s14, %s764_s15  ;;  %p770_p3 = scmp.lt.s32.totalorder %s768_s17, %s764_s15 }
  0x27   : > { %v317_v6 = vsel %vm315_vm0, %v303_v5, 0  ;;  %v360_v31 = vpack.c.b16 %v358_v30, %v358_v30 }
  0x28   : > { %325 = vmatpush.bf16.msra.mxu0 %v317_v6  ;;  %p766_p0 = pnand %p765_p13, %p883_p6  ;;  %p771_p4 = por %p770_p3, %p769_p2 }
  0x2a   : > { %p767_p1 = pneg %p766_p0 }
  0x2c   : > { %326 = vmatpush.bf16.msra.mxu0 %v684_v7  ;;  %p772_p5 = pnand %p771_p4, %p767_p1 }
  0x2f   : > { %655 = vmatmul.msk.bf16.vlgmr.msra.gmra.mxu0 %vm305_vm1, %v685_v8 }
  0x3f   : > { %656 = vmatmul.msk.bf16.gmra.mxu0 %vm305_vm1, %v686_v9 }
  0x4f   : > { %657 = vmatmul.msk.bf16.gmra.mxu0 %vm305_vm1, %v295_v12 }
  0xac   : > { %v914_v13 = vpop.f32.mrf.mxu0 }
  0xad   : > { %v342_v26 = vmul.f32 %v914_v13, %v914_v13 }
  0xb4   : > { %v916_v14 = vpop.f32.mrf.mxu0 }
  0xb5   : > { %v343_v23 = vmul.f32 %v916_v14, %v916_v14 }
  0xb7   : > { %v350_v27 = vpack.c.bf16 %v343_v23, %v342_v26 }
  0xbc   : > { %v918_v15 = vpop.f32.mrf.mxu0 }
  0xbd   : > { %v344_v22 = vmul.f32 %v918_v15, %v918_v15 }
  0xc4   : > { %v920_v16 = vpop.f32.mrf.mxu0 }
  0xc5   : > { %v345_v20 = vmul.f32 %v920_v16, %v920_v16 }
  0xc7   : > { %v351_v25 = vpack.c.bf16 %v345_v20, %v344_v22 }
  0xcc   : > { %v922_v17 = vpop.f32.mrf.mxu0 }
  0xcd   : > { %v346_v18 = vmul.f32 %v922_v17, %v922_v17 }
  0xcf   : > { %v352_v19 = vpack.c.bf16 %v346_v18, %v346_v18 }
  0xd1   : > { %v370_v21 = vsel %vm368_vm2, %v352_v19, 0 }
  0xd2   : > { %377 = vmatpush.bf16.msra.mxu1 %v370_v21 }
  0xd4   : > { %v340_v24 = vpop.f32.mrf.mxu0 }
  0xd6   : > { %378 = vmatpush.bf16.msra.mxu1 %v351_v25 }
  0xda   : > { %379 = vmatpush.bf16.msra.mxu1 %v350_v27 }
  0xdd   : > { %662 = vmatmul.msk.bf16.vlgmr.msra.gmra.mxu1 %vm361_vm3, %v687_v28 }
  0xed   : > { %663 = vmatmul.msk.bf16.gmra.mxu1 %vm361_vm3, %v360_v31 }
 0x15a   : > { %v381_v32 = vpop.f32.mrf.mxu1 }
 0x15b   : > { %v390_v33 = vmax.f32 %v381_v32, 0.0 }
 0x15d   : > { %736 = vrsqrt.f32 %v390_v33  ;;  %vm400_vm5 = vcmp.eq.f32.partialorder %v390_v33, inf  ;;  %v403_v61 = vand.u32 2147483648, %v390_v33  ;;  %vm402_vm7 = vcmp.eq.f32.partialorder %v390_v33, 0.0 }
 0x15e   : > { %v432_v3 = vmul.f32 0.044715, %v390_v33 }
 0x160   : > { %v435_v11 = vadd.f32 1.0, %v432_v3 }
 0x162   : > { %v383_v34 = vpop.f32.mrf.mxu1 }
 0x163   : > { %v737_v35 = vpop.eup %736  ;;  %v391_v36 = vmax.f32 %v383_v34, 0.0  ;;  %v688_v34 = vld [vmem:[%s1005_s3] sm:$0xff] }
 0x164   : > { %v394_v37 = vmul.f32 %v737_v35, %v390_v33 }
 0x165   : > { %738 = vrsqrt.f32 %v391_v36  ;;  %vm412_vm4 = vcmp.eq.f32.partialorder %v391_v36, inf  ;;  %v415_v58 = vand.u32 2147483648, %v391_v36  ;;  %vm414_vm6 = vcmp.eq.f32.partialorder %v391_v36, 0.0 }
 0x166   : > { %v395_v38 = vmul.f32 %v737_v35, %v394_v37  ;;  %v433_v63 = vmul.f32 0.044715, %v391_v36 }
 0x168   : > { %v396_v39 = vmul.f32 0.5, %v395_v38  ;;  %v436_v8 = vadd.f32 1.0, %v433_v63 }
 0x16a   : > { %v386_v40 = vpop.f32.mrf.mxu1  ;;  %v397_v44 = vsub.f32 1.5, %v396_v39 }
 0x16b   : > { %v739_v41 = vpop.eup %738  ;;  %v392_v42 = vmax.f32 %v386_v40, 0.0 }
 0x16c   : > { %v406_v43 = vmul.f32 %v739_v41, %v391_v36  ;;  %v398_v47 = vmul.f32 %v737_v35, %v397_v44  ;;  %v689_v35 = vld [vmem:[%s1005_s3 + $0x8] sm:$0xff] }
 0x16d   : > { %740 = vrsqrt.f32 %v392_v42  ;;  %v434_v5 = vmul.f32 0.044715, %v392_v42  ;;  %vm424_vm8 = vcmp.eq.f32.partialorder %v392_v42, inf  ;;  %v427_v6 = vand.u32 2147483648, %v392_v42 }
 0x16e   : > { %v407_v45 = vmul.f32 %v739_v41, %v406_v43  ;;  %v399_v53 = vmul.f32 %v398_v47, %v390_v33  ;;  %vm426_vm9 = vcmp.eq.f32.partialorder %v392_v42, 0.0 }
 0x16f   : > { %v437_v19 = vadd.f32 1.0, %v434_v5 }
 0x170   : > { %v408_v46 = vmul.f32 0.5, %v407_v45  ;;  %v401_v59 = vsel %vm400_vm5, %v390_v33, %v399_v53 }
 0x171   : > { %v404_v1 = vsel %vm402_vm7, %v403_v61, %v401_v59 }
 0x172   : > { %v388_v48 = vpop.f32.mrf.mxu1  ;;  %v409_v49 = vsub.f32 1.5, %v408_v46  ;;  %v429_v7 = vmul.f32 0.7978846, %v404_v1 }
 0x173   : > { %v741_v50 = vpop.eup %740 }
 0x174   : > { %v418_v51 = vmul.f32 %v741_v50, %v392_v42  ;;  %v410_v52 = vmul.f32 %v739_v41, %v409_v49  ;;  %v438_v20 = vmul.f32 %v435_v11, %v429_v7 }
 0x176   : > { %v419_v54 = vmul.f32 %v741_v50, %v418_v51  ;;  %v411_v55 = vmul.f32 %v410_v52, %v391_v36 }
 0x178   : > { %v420_v56 = vmul.f32 0.5, %v419_v54  ;;  %v413_v57 = vsel %vm412_vm4, %v391_v36, %v411_v55  ;;  %v454_v36 = vld [vmem:[%s1005_s3 + $0x10] sm:$0xf] }
 0x179   : > { %v416_v62 = vsel %vm414_vm6, %v415_v58, %v413_v57  ;;  %v466_v37 = vunpack.c.l.b16 %v454_v36 }
 0x17a   : > { %v421_v60 = vsub.f32 1.5, %v420_v56  ;;  %v430_v2 = vmul.f32 0.7978846, %v416_v62 }
 0x17b   : > { %v469_v38 = vpack.c.b16 %v466_v37, %v466_v37 }
 0x17c   : > { %v422_v0 = vmul.f32 %v741_v50, %v421_v60  ;;  %v439_v12 = vmul.f32 %v436_v8, %v430_v2 }
 0x17e   : > { %v423_v4 = vmul.f32 %v422_v0, %v392_v42  ;;  %742 = vtanh.f32 %v439_v12 }
 0x180   : > { %v425_v9 = vsel %vm424_vm8, %v392_v42, %v423_v4 }
 0x181   : > { %v428_v10 = vsel %vm426_vm9, %v427_v6, %v425_v9 }
 0x182   : > { %v431_v18 = vmul.f32 0.7978846, %v428_v10 }
 0x184   : > { %v440_v21 = vmul.f32 %v437_v19, %v431_v18  ;;  %v743_v22 = vpop.eup %742 }
 0x185   : > { %v445_v26 = vadd.f32 1.0, %v743_v22 }
 0x186   : > { %744 = vtanh.f32 %v440_v21 }
 0x187   : > { %746 = vtanh.f32 %v438_v20  ;;  %v448_v30 = vmul.f32 0.5, %v445_v26 }
 0x18c   : > { %v745_v23 = vpop.eup %744 }
 0x18d   : > { %v747_v24 = vpop.eup %746  ;;  %v446_v25 = vadd.f32 1.0, %v745_v23 }
 0x18e   : > { %v444_v28 = vadd.f32 1.0, %v747_v24 }
 0x18f   : > { %v449_v27 = vmul.f32 0.5, %v446_v25 }
 0x190   : > { %v447_v32 = vmul.f32 0.5, %v444_v28 }
 0x191   : > { %v456_v29 = vpack.c.bf16 %v449_v27, %v449_v27 }
 0x192   : > { %v455_v33 = vpack.c.bf16 %v448_v30, %v447_v32 }
 0x193   : > { %v481_v31 = vsel %vm368_vm2, %v456_v29, 0 }
 0x194   : > { %489 = vmatpush.bf16.msra.mxu2 %v481_v31 }
 0x198   : > { %490 = vmatpush.bf16.msra.mxu2 %v455_v33 }
 0x19b   : > { %672 = vmatmul.msk.bf16.vlgmr.msra.gmra.mxu2 %vm470_vm10, %v688_v34 }
 0x1ab   : > { %673 = vmatmul.msk.bf16.gmra.mxu2 %vm470_vm10, %v689_v35 }
 0x1bb   : > { %674 = vmatmul.msk.bf16.gmra.mxu2 %vm470_vm10, %v469_v38 }
 0x21e   : > { %v492_v39 = vpop.f32.mrf.mxu2 }
 0x21f   : > { %v506_v52 = vmul.f32 %v492_v39, %v914_v13 }
 0x226   : > { %v494_v40 = vpop.f32.mrf.mxu2 }
 0x227   : > { %v507_v49 = vmul.f32 %v494_v40, %v916_v14 }
 0x229   : > { %v511_v53 = vpack.c.bf16 %v507_v49, %v506_v52 }
 0x22e   : > { %v497_v41 = vpop.f32.mrf.mxu2 }
 0x22f   : > { %v508_v48 = vmul.f32 %v497_v41, %v918_v15  ;;  %v516_v15 = vld [vmem:[%s1006_s4 + $0x8] sm:$0x3] }
 0x236   : > { %v499_v42 = vpop.f32.mrf.mxu2 }
 0x237   : > { %v509_v46 = vmul.f32 %v499_v42, %v920_v16  ;;  %v522_v16 = vunpack.c.l.b16 %v516_v15 }
 0x239   : > { %v512_v51 = vpack.c.bf16 %v509_v46, %v508_v48  ;;  %v524_v14 = vpack.c.b16 %v522_v16, %v522_v16 }
 0x23e   : > { %v502_v43 = vpop.f32.mrf.mxu2 }
 0x23f   : > { %v510_v44 = vmul.f32 %v502_v43, %v922_v17  ;;  %v690_v17 = vld [vmem:[%s1006_s4] sm:$0xff] }
 0x241   : > { %v513_v45 = vpack.c.bf16 %v510_v44, %v510_v44 }
 0x243   : > { %v532_v47 = vsel %vm368_vm2, %v513_v45, 0 }
 0x244   : > { %539 = vmatpush.bf16.msra.mxu3 %v532_v47 }
 0x246   : > { %v504_v50 = vpop.f32.mrf.mxu2 }
 0x248   : > { %540 = vmatpush.bf16.msra.mxu3 %v512_v51 }
 0x24c   : > { %541 = vmatpush.bf16.msra.mxu3 %v511_v53 }
 0x24f   : > { %679 = vmatmul.msk.bf16.vlgmr.msra.gmra.mxu3 %vm361_vm3, %v690_v17 }
 0x25f   : > { %680 = vmatmul.msk.bf16.gmra.mxu3 %vm361_vm3, %v524_v14 }
 0x2d2   : > { %v543_v13 = vpop.f32.mrf.mxu3 }
 0x2d3   : > { %552 = vst [vmem:[%s273_s30] sm:$0xff] %v543_v13 }
 0x2da   : > { %v545_v54 = vpop.f32.mrf.mxu3 }
 0x2db   : > { %553 = vst [vmem:[%s273_s30 + $0x8] sm:$0xff] %v545_v54 }
 0x2e2   : > { %v548_v55 = vpop.f32.mrf.mxu3 }
 0x2e3   : > { %554 = vst [vmem:[%s273_s30 + $0x10] sm:$0xf] %v548_v55 }
 0x2e4   : > { %775 = shalt.err (!%p772_p5)
}
 0x2e5   : > { %s812_s12 = smov 128   ;;  %s813_s26 = smov 256  }
 0x2e6   : > { %s814_s30 = smov 8  }
 0x2e7   : > { %694 = dma.vmem_to_hbm [thread:$0]  (%p883_p6), %s568_s10, 384, %s570_s11, %s556_s13, %s812_s12, %s813_s26, %s814_s30  }
 0x2ea   : > { %v550_v56 = vpop.f32.mrf.mxu3 }
 0x2eb PF: > { %s584_s6 = sand.u32 1, %s798_s18   ;;  %p697_p7 = pnand %p640_p9, %p887_p8 }
 0x2ec   : > { %s585_s7 = scalar_lea.sflag [#allocation4], %s584_s6 }
 0x2ed   : > { %p698_p10 = pneg %p697_p7 }
 0x2ef   : > { %793 = dma.done.wait (%p698_p10), %s585_s7, 384  }
 0x2f0   : > { %795 = vsyncadd (%p698_p10), %s585_s7, 4294966912  ;;  %p15_p11 = scmp.ge.s32.totalorder %s868_s24, 4   ;;  %s1010_s18 = smov %s802_s19 }
 0x2f1   : > { %s1011_s19 = smov %s806_s20  ;;  %s1012_s20 = smov %s881_s27 }
 0x2f2   : > { %s1013_s21 = smov %s868_s24  ;;  %17 = sbr.rel (!%p15_p11) target bundleno = 3 (0x3), region = 121 }
 0x2f7   :  { %591 = vsyncpa [#allocation4], 1 }
 0x2f8   :  { %593 = vsyncpa [#allocation4 + $0x1], 1 }

</bundles_post_ra>
